<compile_context>
chip_gen: v6e
topology: v6e:2x2x1
jax: 0.10.0
libtpu: 0.0.40
codegen_flags: <defaults>
</compile_context>

<pallas_src>
import jax
import jax.numpy as jnp
from jax.experimental import pallas as pl
from jax.experimental.pallas import tpu as pltpu

HIDDEN = 256
OUT_DIM = 50
OUT_PAD = 128  # lane-dense output width (multiple of 128)


def _critic_kernel(x_ref, a_ref, w1x_ref, w1a_ref, b1_ref, w2_ref, b2_ref,
                   w3_ref, b3_ref, w4_ref, b4_ref, o_ref):
    f32 = jnp.float32
    bf16 = jnp.bfloat16
    x = x_ref[...].astype(bf16)
    a = a_ref[...].astype(bf16)
    # Layer 1: concat + action scaling already folded into (w1x, w1a).
    h = jnp.dot(x, w1x_ref[...], preferred_element_type=f32)
    h = h + jnp.dot(a, w1a_ref[...], preferred_element_type=f32)
    h = jnp.maximum(h + b1_ref[...], 0.0)
    h = jnp.maximum(
        jnp.dot(h.astype(bf16), w2_ref[...], preferred_element_type=f32) + b2_ref[...], 0.0)
    h = jnp.maximum(
        jnp.dot(h.astype(bf16), w3_ref[...], preferred_element_type=f32) + b3_ref[...], 0.0)
    o = jnp.maximum(
        jnp.dot(h.astype(bf16), w4_ref[...], preferred_element_type=f32) + b4_ref[...], 0.0)
    # Lane-dense (TM, 128) store; the real 50 columns are sliced out by the wrapper.
    o_ref[...] = o.astype(o_ref.dtype)


def init_params(key, in_dim, hidden=HIDDEN, out_dim=OUT_DIM):
    """PyTorch-style Linear init: U(-1/sqrt(fan_in), 1/sqrt(fan_in)).
    Weights are [in, out]; biases are [1, out]."""
    dims = [(in_dim, hidden), (hidden, hidden), (hidden, hidden), (hidden, out_dim)]
    params = []
    for fan_in, fan_out in dims:
        key, kw, kb = jax.random.split(key, 3)
        bound = 1.0 / jnp.sqrt(jnp.float32(fan_in))
        w = jax.random.uniform(kw, (fan_in, fan_out), jnp.float32, -bound, bound)
        b = jax.random.uniform(kb, (1, fan_out), jnp.float32, -bound, bound)
        params += [w, b]
    return params


def prepare_params(params, max_action, obs_goal_dim):
    """One-time (outside hot path) prep: split W1, fold 1/max_action into the action
    slice, pad the head to 128 lanes, and pre-cast weights to bf16 (biases stay f32)."""
    w1, b1, w2, b2, w3, b3, w4, b4 = params
    w1x = w1[:obs_goal_dim].astype(jnp.bfloat16)
    w1a = (w1[obs_goal_dim:] / max_action).astype(jnp.bfloat16)  # fold action scale
    w4p = jnp.zeros((w4.shape[0], OUT_PAD), jnp.float32).at[:, :w4.shape[1]].set(w4)
    b4p = jnp.zeros((1, OUT_PAD), jnp.float32).at[:, :b4.shape[1]].set(b4)
    return (w1x, w1a, b1.astype(jnp.float32),
            w2.astype(jnp.bfloat16), b2.astype(jnp.float32),
            w3.astype(jnp.bfloat16), b3.astype(jnp.float32),
            w4p.astype(jnp.bfloat16), b4p.astype(jnp.float32))


def _round_up(n, m):
    return (n + m - 1) // m * m


def base_critic_forward(x, actions, kparams, out_dim=OUT_DIM):
    """x: (B, obs+goal) f32, actions: (B, action) f32 -> (B, out_dim) f32."""
    (w1x, w1a, b1, w2, b2, w3, b3, w4p, b4p) = kparams
    B, xdim = x.shape
    adim = actions.shape[1]

    # Batch tile: big enough to amortize the ~0.35us per-grid-step overhead, small
    # enough that double-buffered (x, out) blocks + resident weights (~0.3 MB bf16)
    # + the (TM, 256) f32 hidden stay far under the default scoped VMEM on all
    # chips (16 MiB v5e / 32 MiB v6e, v7x).
    TM = 512 if B >= 512 else _round_up(max(B, 8), 8)
    Bp = _round_up(B, TM)
    if Bp != B:
        x = jnp.pad(x, ((0, Bp - B), (0, 0)))
        actions = jnp.pad(actions, ((0, Bp - B), (0, 0)))
    x = x.astype(jnp.float32)
    actions = actions.astype(jnp.float32)

    def batch_block(shape):
        return pl.BlockSpec(shape, lambda i: (i, 0))

    def resident(arr):
        # Full-array block + constant index_map: stays in VMEM across grid steps.
        return pl.BlockSpec(arr.shape, lambda i: (0, 0))

    out = pl.pallas_call(
        _critic_kernel,
        out_shape=jax.ShapeDtypeStruct((Bp, OUT_PAD), jnp.float32),
        grid=(Bp // TM,),
        in_specs=[
            batch_block((TM, xdim)),
            batch_block((TM, adim)),
            resident(w1x), resident(w1a), resident(b1),
            resident(w2), resident(b2),
            resident(w3), resident(b3),
            resident(w4p), resident(b4p),
        ],
        out_specs=batch_block((TM, OUT_PAD)),
        compiler_params=pltpu.CompilerParams(
            dimension_semantics=("parallel",)),  # v7x: shard batch over 2 TCs
    )(x, actions, w1x, w1a, b1, w2, b2, w3, b3, w4p, b4p)

    return out[:B, :out_dim]


def reference_forward(x, actions, params, max_action):
    """Pure f32 JAX reference with the exact module semantics."""
    xin = jnp.concatenate([x, actions / max_action], axis=1)
    w1, b1, w2, b2, w3, b3, w4, b4 = params
    h = jax.nn.relu(xin @ w1 + b1)
    h = jax.nn.relu(h @ w2 + b2)
    h = jax.nn.relu(h @ w3 + b3)
    # NOTE: trailing ReLU on the Q head is what the PyTorch spec does.
    return jax.nn.relu(h @ w4 + b4)


if __name__ == "__main__":
    env_params = {"obs": 10, "goal": 5, "action": 4,
                  "action_max": 1.0, "num_reward": 1}
    batch = 8
    obs_goal = env_params["obs"] + env_params["goal"]
    in_dim = obs_goal + env_params["action"]

    key = jax.random.PRNGKey(0)
    key, kx, ka = jax.random.split(key, 3)
    x = jax.random.normal(kx, (batch, obs_goal), dtype=jnp.float32)
    actions = jax.random.uniform(ka, (batch, env_params["action"]),
                                 dtype=jnp.float32, minval=-1.0, maxval=1.0)

    params = init_params(key, in_dim)
    kparams = prepare_params(params, env_params["action_max"], obs_goal)

    out = base_critic_forward(x, actions, kparams)
    out = jax.block_until_ready(out)
    assert out.shape == (batch, OUT_DIM)

    # Kernel uses bf16 matmul inputs with f32 accumulation, so compare against the
    # f32 reference with a bf16-appropriate tolerance.
    ref = reference_forward(x, actions, params, env_params["action_max"])
    scale = jnp.maximum(jnp.max(jnp.abs(ref)), 1.0)
    rel_err = float(jnp.max(jnp.abs(out - ref)) / scale)
    assert rel_err < 3e-2, f"mismatch vs f32 reference: rel err {rel_err:.4f}"

    print("KERNEL_OK")
</pallas_src>

<mosaic_0001>
module attributes {stable_mosaic.version = 11 : i64} {
  func.func @_critic_kernel(%arg0: i32, %arg1: memref<8x15xf32, #tpu.memory_space<vmem>>, %arg2: memref<8x4xf32, #tpu.memory_space<vmem>>, %arg3: memref<15x256xbf16, #tpu.memory_space<vmem>>, %arg4: memref<4x256xbf16, #tpu.memory_space<vmem>>, %arg5: memref<1x256xf32, #tpu.memory_space<vmem>>, %arg6: memref<256x256xbf16, #tpu.memory_space<vmem>>, %arg7: memref<1x256xf32, #tpu.memory_space<vmem>>, %arg8: memref<256x256xbf16, #tpu.memory_space<vmem>>, %arg9: memref<1x256xf32, #tpu.memory_space<vmem>>, %arg10: memref<256x128xbf16, #tpu.memory_space<vmem>>, %arg11: memref<1x128xf32, #tpu.memory_space<vmem>>, %arg12: memref<8x128xf32, #tpu.memory_space<vmem>>) attributes {dimension_semantics = [#tpu.dimension_semantics<parallel>], iteration_bounds = array<i64: 1>, scalar_prefetch = 0 : i64, scratch_operands = 0 : i64, tpu.core_type = #tpu.core_type<tc>, window_params = [{transform_indices = @transform_0, window_bounds = array<i64: 8, 15>}, {transform_indices = @transform_1, window_bounds = array<i64: 8, 4>}, {pipeline_mode = #tpu.pipeline_mode<synchronous>, transform_indices = @transform_2, window_bounds = array<i64: 15, 256>}, {pipeline_mode = #tpu.pipeline_mode<synchronous>, transform_indices = @transform_3, window_bounds = array<i64: 4, 256>}, {pipeline_mode = #tpu.pipeline_mode<synchronous>, transform_indices = @transform_4, window_bounds = array<i64: 1, 256>}, {pipeline_mode = #tpu.pipeline_mode<synchronous>, transform_indices = @transform_5, window_bounds = array<i64: 256, 256>}, {pipeline_mode = #tpu.pipeline_mode<synchronous>, transform_indices = @transform_6, window_bounds = array<i64: 1, 256>}, {pipeline_mode = #tpu.pipeline_mode<synchronous>, transform_indices = @transform_7, window_bounds = array<i64: 256, 256>}, {pipeline_mode = #tpu.pipeline_mode<synchronous>, transform_indices = @transform_8, window_bounds = array<i64: 1, 256>}, {pipeline_mode = #tpu.pipeline_mode<synchronous>, transform_indices = @transform_9, window_bounds = array<i64: 256, 128>}, {pipeline_mode = #tpu.pipeline_mode<synchronous>, transform_indices = @transform_10, window_bounds = array<i64: 1, 128>}, {transform_indices = @transform_11, window_bounds = array<i64: 8, 128>}]} {
    %c0 = arith.constant 0 : index
    %c0_0 = arith.constant 0 : index
    %0 = vector.load %arg1[%c0, %c0_0] : memref<8x15xf32, #tpu.memory_space<vmem>>, vector<8x15xf32>
    %1 = arith.truncf %0 : vector<8x15xf32> to vector<8x15xbf16>
    %c0_1 = arith.constant 0 : index
    %c0_2 = arith.constant 0 : index
    %2 = vector.load %arg2[%c0_1, %c0_2] : memref<8x4xf32, #tpu.memory_space<vmem>>, vector<8x4xf32>
    %3 = arith.truncf %2 : vector<8x4xf32> to vector<8x4xbf16>
    %c0_3 = arith.constant 0 : index
    %c0_4 = arith.constant 0 : index
    %4 = vector.load %arg3[%c0_3, %c0_4] : memref<15x256xbf16, #tpu.memory_space<vmem>>, vector<15x256xbf16>
    %cst = arith.constant dense<0.000000e+00> : vector<8x256xf32>
    %5 = tpu.matmul %1, %4, %cst {dimension_numbers = #tpu.dot_dimension_numbers<[1], [0], [0], [1], [0, 0, 1, 1], [], []>} : vector<8x15xbf16>, vector<15x256xbf16>, vector<8x256xf32> -> vector<8x256xf32>
    %c0_5 = arith.constant 0 : index
    %c0_6 = arith.constant 0 : index
    %6 = vector.load %arg4[%c0_5, %c0_6] : memref<4x256xbf16, #tpu.memory_space<vmem>>, vector<4x256xbf16>
    %cst_7 = arith.constant dense<0.000000e+00> : vector<8x256xf32>
    %7 = tpu.matmul %3, %6, %cst_7 {dimension_numbers = #tpu.dot_dimension_numbers<[1], [0], [0], [1], [0, 0, 1, 1], [], []>} : vector<8x4xbf16>, vector<4x256xbf16>, vector<8x256xf32> -> vector<8x256xf32>
    %8 = arith.addf %5, %7 : vector<8x256xf32>
    %c0_8 = arith.constant 0 : index
    %c0_9 = arith.constant 0 : index
    %9 = vector.load %arg5[%c0_8, %c0_9] : memref<1x256xf32, #tpu.memory_space<vmem>>, vector<1x256xf32>
    %10 = vector.broadcast %9 : vector<1x256xf32> to vector<8x256xf32>
    %11 = arith.addf %8, %10 : vector<8x256xf32>
    %cst_10 = arith.constant 0.000000e+00 : f32
    %12 = vector.broadcast %cst_10 : f32 to vector<8x256xf32>
    %13 = arith.maximumf %11, %12 : vector<8x256xf32>
    %14 = arith.truncf %13 : vector<8x256xf32> to vector<8x256xbf16>
    %c0_11 = arith.constant 0 : index
    %c0_12 = arith.constant 0 : index
    %15 = vector.load %arg6[%c0_11, %c0_12] : memref<256x256xbf16, #tpu.memory_space<vmem>>, vector<256x256xbf16>
    %cst_13 = arith.constant dense<0.000000e+00> : vector<8x256xf32>
    %16 = tpu.matmul %14, %15, %cst_13 {dimension_numbers = #tpu.dot_dimension_numbers<[1], [0], [0], [1], [0, 0, 1, 1], [], []>} : vector<8x256xbf16>, vector<256x256xbf16>, vector<8x256xf32> -> vector<8x256xf32>
    %c0_14 = arith.constant 0 : index
    %c0_15 = arith.constant 0 : index
    %17 = vector.load %arg7[%c0_14, %c0_15] : memref<1x256xf32, #tpu.memory_space<vmem>>, vector<1x256xf32>
    %18 = vector.broadcast %17 : vector<1x256xf32> to vector<8x256xf32>
    %19 = arith.addf %16, %18 : vector<8x256xf32>
    %cst_16 = arith.constant 0.000000e+00 : f32
    %20 = vector.broadcast %cst_16 : f32 to vector<8x256xf32>
    %21 = arith.maximumf %19, %20 : vector<8x256xf32>
    %22 = arith.truncf %21 : vector<8x256xf32> to vector<8x256xbf16>
    %c0_17 = arith.constant 0 : index
    %c0_18 = arith.constant 0 : index
    %23 = vector.load %arg8[%c0_17, %c0_18] : memref<256x256xbf16, #tpu.memory_space<vmem>>, vector<256x256xbf16>
    %cst_19 = arith.constant dense<0.000000e+00> : vector<8x256xf32>
    %24 = tpu.matmul %22, %23, %cst_19 {dimension_numbers = #tpu.dot_dimension_numbers<[1], [0], [0], [1], [0, 0, 1, 1], [], []>} : vector<8x256xbf16>, vector<256x256xbf16>, vector<8x256xf32> -> vector<8x256xf32>
    %c0_20 = arith.constant 0 : index
    %c0_21 = arith.constant 0 : index
    %25 = vector.load %arg9[%c0_20, %c0_21] : memref<1x256xf32, #tpu.memory_space<vmem>>, vector<1x256xf32>
    %26 = vector.broadcast %25 : vector<1x256xf32> to vector<8x256xf32>
    %27 = arith.addf %24, %26 : vector<8x256xf32>
    %cst_22 = arith.constant 0.000000e+00 : f32
    %28 = vector.broadcast %cst_22 : f32 to vector<8x256xf32>
    %29 = arith.maximumf %27, %28 : vector<8x256xf32>
    %30 = arith.truncf %29 : vector<8x256xf32> to vector<8x256xbf16>
    %c0_23 = arith.constant 0 : index
    %c0_24 = arith.constant 0 : index
    %31 = vector.load %arg10[%c0_23, %c0_24] : memref<256x128xbf16, #tpu.memory_space<vmem>>, vector<256x128xbf16>
    %cst_25 = arith.constant dense<0.000000e+00> : vector<8x128xf32>
    %32 = tpu.matmul %30, %31, %cst_25 {dimension_numbers = #tpu.dot_dimension_numbers<[1], [0], [0], [1], [0, 0, 1, 1], [], []>} : vector<8x256xbf16>, vector<256x128xbf16>, vector<8x128xf32> -> vector<8x128xf32>
    %c0_26 = arith.constant 0 : index
    %c0_27 = arith.constant 0 : index
    %33 = vector.load %arg11[%c0_26, %c0_27] : memref<1x128xf32, #tpu.memory_space<vmem>>, vector<1x128xf32>
    %34 = vector.broadcast %33 : vector<1x128xf32> to vector<8x128xf32>
    %35 = arith.addf %32, %34 : vector<8x128xf32>
    %cst_28 = arith.constant 0.000000e+00 : f32
    %36 = vector.broadcast %cst_28 : f32 to vector<8x128xf32>
    %37 = arith.maximumf %35, %36 : vector<8x128xf32>
    %c0_29 = arith.constant 0 : index
    %c0_30 = arith.constant 0 : index
    %38 = vector.load %arg12[%c0_29, %c0_30] : memref<8x128xf32, #tpu.memory_space<vmem>>, vector<8x128xf32>
    tpu.vector_store %arg12[%c0_29, %c0_30], %37 {strides = array<i32>} : memref<8x128xf32, #tpu.memory_space<vmem>>, vector<8x128xf32>,
    return
  }
  func.func @transform_0(%arg0: i32) -> (i32, i32) {
    %c0_i32 = arith.constant 0 : i32
    %c0_i32_0 = arith.constant 0 : i32
    return %arg0, %c0_i32 : i32, i32
  }
  func.func @transform_1(%arg0: i32) -> (i32, i32) {
    %c0_i32 = arith.constant 0 : i32
    %c0_i32_0 = arith.constant 0 : i32
    return %arg0, %c0_i32 : i32, i32
  }
  func.func @transform_2(%arg0: i32) -> (i32, i32) {
    %c0_i32 = arith.constant 0 : i32
    %c0_i32_0 = arith.constant 0 : i32
    %c0_i32_1 = arith.constant 0 : i32
    return %c0_i32, %c0_i32_0 : i32, i32
  }
  func.func @transform_3(%arg0: i32) -> (i32, i32) {
    %c0_i32 = arith.constant 0 : i32
    %c0_i32_0 = arith.constant 0 : i32
    %c0_i32_1 = arith.constant 0 : i32
    return %c0_i32, %c0_i32_0 : i32, i32
  }
  func.func @transform_4(%arg0: i32) -> (i32, i32) {
    %c0_i32 = arith.constant 0 : i32
    %c0_i32_0 = arith.constant 0 : i32
    %c0_i32_1 = arith.constant 0 : i32
    return %c0_i32, %c0_i32_0 : i32, i32
  }
  func.func @transform_5(%arg0: i32) -> (i32, i32) {
    %c0_i32 = arith.constant 0 : i32
    %c0_i32_0 = arith.constant 0 : i32
    %c0_i32_1 = arith.constant 0 : i32
    return %c0_i32, %c0_i32_0 : i32, i32
  }
  func.func @transform_6(%arg0: i32) -> (i32, i32) {
    %c0_i32 = arith.constant 0 : i32
    %c0_i32_0 = arith.constant 0 : i32
    %c0_i32_1 = arith.constant 0 : i32
    return %c0_i32, %c0_i32_0 : i32, i32
  }
  func.func @transform_7(%arg0: i32) -> (i32, i32) {
    %c0_i32 = arith.constant 0 : i32
    %c0_i32_0 = arith.constant 0 : i32
    %c0_i32_1 = arith.constant 0 : i32
    return %c0_i32, %c0_i32_0 : i32, i32
  }
  func.func @transform_8(%arg0: i32) -> (i32, i32) {
    %c0_i32 = arith.constant 0 : i32
    %c0_i32_0 = arith.constant 0 : i32
    %c0_i32_1 = arith.constant 0 : i32
    return %c0_i32, %c0_i32_0 : i32, i32
  }
  func.func @transform_9(%arg0: i32) -> (i32, i32) {
    %c0_i32 = arith.constant 0 : i32
    %c0_i32_0 = arith.constant 0 : i32
    %c0_i32_1 = arith.constant 0 : i32
    return %c0_i32, %c0_i32_0 : i32, i32
  }
  func.func @transform_10(%arg0: i32) -> (i32, i32) {
    %c0_i32 = arith.constant 0 : i32
    %c0_i32_0 = arith.constant 0 : i32
    %c0_i32_1 = arith.constant 0 : i32
    return %c0_i32, %c0_i32_0 : i32, i32
  }
  func.func @transform_11(%arg0: i32) -> (i32, i32) {
    %c0_i32 = arith.constant 0 : i32
    %c0_i32_0 = arith.constant 0 : i32
    return %arg0, %c0_i32 : i32, i32
  }
}

</mosaic_0001>

<bundles_post_ra>
// kernel: tpu_custom_call.1
= control target key start
LH: loop header
LB: loop body
LE: loop exit
PB: predicated region body
PF: predicated region fallthrough
CT: control target
= control target key end

     0   :  { %16 = vsyncpa [#allocation3], 0  ;;  %s1396_s0 = inlined_call_operand.vmem [shape: f32[8,15], index: 0, kind: input, shape index: {}]   ;;  %s1397_s1 = inlined_call_operand.vmem [shape: f32[8,4], index: 1, kind: input, shape index: {}]   ;;  %s1398_s2 = inlined_call_operand.hbm [shape: bf16[15,256], index: 2, kind: input, shape index: {}]   ;;  %s1399_s3 = inlined_call_operand.vmem [shape: bf16[4,256], index: 3, kind: input, shape index: {}]   ;;  %s1400_s4 = inlined_call_operand.vmem [shape: f32[1,256], index: 4, kind: input, shape index: {}]   ;;  %s1401_s5 = inlined_call_operand.hbm [shape: bf16[256,256], index: 5, kind: input, shape index: {}]   ;;  %s1402_s6 = inlined_call_operand.vmem [shape: f32[1,256], index: 6, kind: input, shape index: {}]   ;;  %s1403_s7 = inlined_call_operand.hbm [shape: bf16[256,256], index: 7, kind: input, shape index: {}]   ;;  %s1404_s8 = inlined_call_operand.vmem [shape: f32[1,256], index: 8, kind: input, shape index: {}]   ;;  %s1405_s9 = inlined_call_operand.hbm [shape: bf16[256,128], index: 9, kind: input, shape index: {}]   ;;  %s1406_s10 = inlined_call_operand.vmem [shape: f32[1,128], index: 10, kind: input, shape index: {}]   ;;  %s1407_s11 = inlined_call_operand.hbm [shape: f32[8,128], index: 11, kind: output, shape index: {}]  }
   0x1   :  { %17 = vsyncpa [#allocation6], 0 }
   0x2   :  { %18 = vsyncpa [#allocation9], 0 }
   0x3   :  { %19 = vsyncpa [#allocation4], 0  ;;  %s1279_s17 = smov [#allocation5]   ;;  %s1280_s19 = smov [#allocation2]  }
   0x4   :  { %s45_s18 = sshll.u32 %s1279_s17, 4  ;;  %s29_s20 = sshll.u32 %s1280_s19, 4  ;;  %s46_s18 = int_to_ptr.vmem [resolvable:$true] %s45_s18  ;;  %s30_s20 = int_to_ptr.vmem [resolvable:$true] %s29_s20 }
   0x5   :  { %s1179_s21 = scalar_lea.vmem %s46_s18, 4096  ;;  %p1184_p1 = scmp.lt.s32.totalorder %s46_s18, %s46_s18 }
   0x6   :  { %p1180_p0 = scmp.ne.s32.totalorder %s46_s18, %s1179_s21  ;;  %p1185_p2 = scmp.lt.s32.totalorder %s1179_s21, %s1179_s21 }
   0x8   :  { %p1186_p3 = por %p1185_p2, %p1184_p1 }
   0xa   :  { %p1187_p4 = pnand %p1186_p3, %p1180_p0 }
   0xc   :  { %1190 = shalt.err (!%p1187_p4)
}
   0xd   :  { %s1281_s22 = smov 128   ;;  %s1282_s23 = smov 8  }
   0xe   :  { %51 = dma.hbm_to_vmem [thread:$0]  %s1401_s5, 4096, %s46_s18, [#allocation6], %s1281_s22, %s1281_s22, %s1282_s23  }
   0xf   :  { %s1199_s26 = scalar_lea.vmem %s30_s20, 256  ;;  %p1204_p6 = scmp.lt.s32.totalorder %s30_s20, %s30_s20 }
  0x10   :  { %p1200_p5 = scmp.ne.s32.totalorder %s30_s20, %s1199_s26  ;;  %p1205_p7 = scmp.lt.s32.totalorder %s1199_s26, %s1199_s26 }
  0x12   :  { %p1206_p8 = por %p1205_p7, %p1204_p6 }
  0x14   :  { %p1207_p9 = pnand %p1206_p8, %p1200_p5 }
  0x16   :  { %1210 = shalt.err (!%p1207_p9)
}
  0x17   :  { %35 = dma.hbm_to_vmem [thread:$0]  %s1398_s2, 256, %s30_s20, [#allocation3], %s1281_s22, %s1281_s22, %s1282_s23  }
  0x18   :  { %s1283_s29 = smov [#allocation7]   ;;  %s1284_s12 = smov [#allocation8]  }
  0x19   :  { %s59_s30 = sshll.u32 %s1283_s29, 4  ;;  %s73_s13 = sshll.u32 %s1284_s12, 4  ;;  %s60_s30 = int_to_ptr.vmem [resolvable:$true] %s59_s30  ;;  %s74_s13 = int_to_ptr.vmem [resolvable:$true] %s73_s13 }
  0x1a   :  { %s1219_s14 = scalar_lea.vmem %s60_s30, 4096  ;;  %p1224_p11 = scmp.lt.s32.totalorder %s60_s30, %s60_s30 }
  0x1b   :  { %p1220_p10 = scmp.ne.s32.totalorder %s60_s30, %s1219_s14  ;;  %p1225_p12 = scmp.lt.s32.totalorder %s1219_s14, %s1219_s14 }
  0x1d   :  { %p1226_p13 = por %p1225_p12, %p1224_p11 }
  0x1f   :  { %p1227_p0 = pnand %p1226_p13, %p1220_p10 }
  0x21   :  { %1230 = shalt.err (!%p1227_p0)
}
  0x22   :  { %65 = dma.hbm_to_vmem [thread:$0]  %s1403_s7, 4096, %s60_s30, [#allocation6], %s1281_s22, %s1281_s22, %s1282_s23  }
  0x23   :  { %s1239_s16 = scalar_lea.vmem %s74_s13, 2048  ;;  %p1244_p2 = scmp.lt.s32.totalorder %s74_s13, %s74_s13 }
  0x24   :  { %p1240_p1 = scmp.ne.s32.totalorder %s74_s13, %s1239_s16  ;;  %p1245_p3 = scmp.lt.s32.totalorder %s1239_s16, %s1239_s16 }
  0x26   :  { %p1246_p4 = por %p1245_p3, %p1244_p2 }
  0x28   :  { %p1247_p5 = pnand %p1246_p4, %p1240_p1 }
  0x2a   :  { %1250 = shalt.err (!%p1247_p5)
}
  0x2b   :  { %s1285_s2 = smov 64   ;;  %s1286_s17 = smov 4  }
  0x2c   :  { %79 = dma.hbm_to_vmem [thread:$0]  %s1405_s9, 2048, %s74_s13, [#allocation9], %s1285_s2, %s1285_s2, %s1286_s17  }
  0x2d   :  { %1271 = dma.done.wait [#allocation3], 256  }
  0x2e   :  { %1272 = vsyncadd [#allocation3], 4294967040 }
  0x2f   :  { %1273 = dma.done.wait [#allocation6], 8192  }
  0x30   :  { %1274 = vsyncadd [#allocation6], 4294959104 }
  0x31   :  { %1275 = dma.done.wait [#allocation9], 2048  }
  0x32   :  { %1276 = vsyncadd [#allocation9], 4294965248  ;;  %vm175_vm0 = vcmask 1046528   ;;  %v1287_v0 = vmov 0   ;;  %vm176_vm1 = vcmask 1047552   ;;  %v1288_v1 = vmov 65535  }
  0x33   :  { %154 = vmatprep.mubr.bf16.mxu1 %v1287_v0  ;;  %v177_v2 = vsel %vm175_vm0, 4294967295, %v1288_v1  ;;  %vm115_vm2 = vcmask 1041408   ;;  %v936_v4 = vld.sshfl [vmem:[%s1399_s3] sm:$0x33 pattern:$0x76325410] }
  0x34   :  { %v178_v3 = vsel %vm176_vm1, %v177_v2, 0  ;;  %v97_v5 = vld [vmem:[%s1397_s1] sm:$0xff]  ;;  %v110_v6 = vcombine.high %v936_v4, %v936_v4  ;;  %v117_v7 = vsel %vm115_vm2, %v936_v4, 0  ;;  %vm111_vm3 = vcmask 31744   ;;  %v1062_v15 = vld [vmem:[#allocation5 + $0x64] ss:$8 sps:$4 sm:$0xff]  }
  0x35   :  { %v1056_v8 = vld [vmem:[#allocation2] ss:$8 sps:$4 sm:$0xff]   ;;  %v1058_v9 = vld [vmem:[#allocation2 + $0x4] ss:$8 sps:$4 sm:$0xff]   ;;  %v98_v10 = vpack.c.bf16 %v97_v5, %v97_v5  ;;  %v1064_v16 = vld [vmem:[#allocation5 + $0x60] ss:$8 sps:$4 sm:$0xff]  }
  0x36   :  { %937 = vmatprep.subr.msk.bf16.mxu1 %vm115_vm2, %v110_v6  ;;  %v183_v11 = vand.u32 %v1058_v9, %v178_v3  ;;  %v1059_v12 = vld [vmem:[#allocation5 + $0x74] ss:$8 sps:$4 sm:$0xff]   ;;  %v1061_v13 = vld [vmem:[#allocation5 + $0x70] ss:$8 sps:$4 sm:$0xff]   ;;  %v180_v14 = vand.u32 %v1056_v8, %v178_v3  ;;  %v1068_v21 = vld [vmem:[#allocation5 + $0x44] ss:$8 sps:$4 sm:$0xff]  }
  0x37   :  { %137 = vmatpush1.bf16.msra.mxu1 %v117_v7  ;;  %448 = vmatprep.subr.bf16.mxu0 %v1059_v12  ;;  %v1065_v17 = vld [vmem:[#allocation5 + $0x54] ss:$8 sps:$4 sm:$0xff]   ;;  %v1067_v19 = vld [vmem:[#allocation5 + $0x50] ss:$8 sps:$4 sm:$0xff]   ;;  %vm171_vm4 = vcmask 121856  }
  0x38   :  { %199 = vmatprep.subr.bf16.mxu1 %v183_v11  ;;  %449 = vmatpush1.bf16.msra.mxu0 %v1061_v13  ;;  %v95_v18 = vld [vmem:[%s1396_s0] sm:$0xff]  ;;  %v1070_v22 = vld [vmem:[#allocation5 + $0x40] ss:$8 sps:$4 sm:$0xff]   ;;  %v1074_v25 = vld [vmem:[#allocation5 + $0x24] ss:$8 sps:$4 sm:$0xff]   ;;  %v228_v11 = vlaneseq }
  0x39   :  { %450 = vmatprep.subr.bf16.mxu0 %v1062_v15  ;;  %v96_v20 = vpack.c.bf16 %v95_v18, %v95_v18  ;;  %v1071_v23 = vld [vmem:[#allocation5 + $0x34] ss:$8 sps:$4 sm:$0xff]   ;;  %v1073_v24 = vld [vmem:[#allocation5 + $0x30] ss:$8 sps:$4 sm:$0xff]   ;;  %v1076_v26 = vld [vmem:[#allocation5 + $0x20] ss:$8 sps:$4 sm:$0xff]  }
  0x3a   :  { %938 = vmatmul.mubr.msk.bf16.vlgmr.msra.gmra.mxu1 %vm111_vm3, %v98_v10  ;;  %v1077_v27 = vld [vmem:[#allocation5 + $0x14] ss:$8 sps:$4 sm:$0xff]   ;;  %v1079_v28 = vld [vmem:[#allocation5 + $0x10] ss:$8 sps:$4 sm:$0xff]   ;;  %v1080_v29 = vld [vmem:[#allocation5 + $0x4] ss:$8 sps:$4 sm:$0xff]  }
  0x3b   :  { %200 = vmatpush1.bf16.msra.mxu1 %v180_v14  ;;  %217 = vmatprep.mubr.bf16.mxu1 %v1287_v0  ;;  %v1082_v30 = vld [vmem:[#allocation5] ss:$8 sps:$4 sm:$0xff]   ;;  %v1083_v31 = vld [vmem:[#allocation5 + $0xf4] ss:$8 sps:$4 sm:$0xff]   ;;  %v1085_v32 = vld [vmem:[#allocation5 + $0xf0] ss:$8 sps:$4 sm:$0xff]  }
  0x3c   :  { %451 = vmatpush1.bf16.msra.mxu0 %v1064_v16  ;;  %v1086_v33 = vld [vmem:[#allocation5 + $0xe4] ss:$8 sps:$4 sm:$0xff]   ;;  %v1088_v34 = vld [vmem:[#allocation5 + $0xe0] ss:$8 sps:$4 sm:$0xff]   ;;  %v1089_v35 = vld [vmem:[#allocation5 + $0xd4] ss:$8 sps:$4 sm:$0xff]  }
  0x3d   :  { %452 = vmatprep.subr.bf16.mxu0 %v1065_v17  ;;  %v1091_v36 = vld [vmem:[#allocation5 + $0xd0] ss:$8 sps:$4 sm:$0xff]   ;;  %v1092_v37 = vld [vmem:[#allocation5 + $0xc4] ss:$8 sps:$4 sm:$0xff]   ;;  %v1094_v38 = vld [vmem:[#allocation5 + $0xc0] ss:$8 sps:$4 sm:$0xff]  }
  0x3e   :  { %v1095_v39 = vld [vmem:[#allocation5 + $0xb4] ss:$8 sps:$4 sm:$0xff]   ;;  %v1097_v40 = vld [vmem:[#allocation5 + $0xb0] ss:$8 sps:$4 sm:$0xff]   ;;  %v1098_v41 = vld [vmem:[#allocation5 + $0xa4] ss:$8 sps:$4 sm:$0xff]  }
  0x3f   :  { %v1100_v42 = vld [vmem:[#allocation5 + $0xa0] ss:$8 sps:$4 sm:$0xff]   ;;  %v1101_v43 = vld [vmem:[#allocation5 + $0x94] ss:$8 sps:$4 sm:$0xff]   ;;  %v1103_v44 = vld [vmem:[#allocation5 + $0x90] ss:$8 sps:$4 sm:$0xff]  }
  0x40   :  { %453 = vmatpush1.bf16.msra.mxu0 %v1067_v19  ;;  %v1104_v45 = vld [vmem:[#allocation5 + $0x84] ss:$8 sps:$4 sm:$0xff]   ;;  %v1106_v46 = vld [vmem:[#allocation5 + $0x80] ss:$8 sps:$4 sm:$0xff]   ;;  %v1107_v47 = vld [vmem:[#allocation7 + $0x70] ss:$8 sps:$4 sm:$0xff]  }
  0x41   :  { %454 = vmatprep.subr.bf16.mxu0 %v1068_v21  ;;  %v1109_v48 = vld [vmem:[#allocation7 + $0x74] ss:$8 sps:$4 sm:$0xff]   ;;  %v1112_v49 = vld [vmem:[#allocation7 + $0x64] ss:$8 sps:$4 sm:$0xff]   ;;  %v1110_v50 = vld [vmem:[#allocation7 + $0x60] ss:$8 sps:$4 sm:$0xff]  }
  0x42   :  { %941 = vmatmul.mubr.msk.bf16.vlgmr.msra.gmra.mxu1 %vm171_vm4, %v96_v20  ;;  %697 = vmatprep.subr.bf16.mxu1 %v1109_v48  ;;  %v1115_v51 = vld [vmem:[#allocation7 + $0x54] ss:$8 sps:$4 sm:$0xff]   ;;  %v1113_v52 = vld [vmem:[#allocation7 + $0x50] ss:$8 sps:$4 sm:$0xff]   ;;  %v1118_v53 = vld [vmem:[#allocation7 + $0x44] ss:$8 sps:$4 sm:$0xff]  }
  0x43   :  { %698 = vmatpush1.bf16.msra.mxu1 %v1107_v47  ;;  %v1116_v54 = vld [vmem:[#allocation7 + $0x40] ss:$8 sps:$4 sm:$0xff]   ;;  %v1121_v55 = vld [vmem:[#allocation7 + $0x34] ss:$8 sps:$4 sm:$0xff]   ;;  %v1119_v56 = vld [vmem:[#allocation7 + $0x30] ss:$8 sps:$4 sm:$0xff]  }
  0x44   :  { %455 = vmatpush1.bf16.msra.mxu0 %v1070_v22  ;;  %699 = vmatprep.subr.bf16.mxu1 %v1112_v49  ;;  %v1124_v57 = vld [vmem:[#allocation7 + $0x24] ss:$8 sps:$4 sm:$0xff]   ;;  %v1122_v58 = vld [vmem:[#allocation7 + $0x20] ss:$8 sps:$4 sm:$0xff]   ;;  %v1127_v59 = vld [vmem:[#allocation7 + $0x14] ss:$8 sps:$4 sm:$0xff]  }
  0x45   :  { %456 = vmatprep.subr.bf16.mxu0 %v1071_v23  ;;  %v1125_v60 = vld [vmem:[#allocation7 + $0x10] ss:$8 sps:$4 sm:$0xff]   ;;  %v1130_v61 = vld [vmem:[#allocation7 + $0x4] ss:$8 sps:$4 sm:$0xff]   ;;  %v1128_v62 = vld [vmem:[#allocation7] ss:$8 sps:$4 sm:$0xff]  }
  0x46   :  { %v1133_v63 = vld [vmem:[#allocation7 + $0xf4] ss:$8 sps:$4 sm:$0xff]   ;;  %v1131_v0 = vld [vmem:[#allocation7 + $0xf0] ss:$8 sps:$4 sm:$0xff]   ;;  %v1136_v1 = vld [vmem:[#allocation7 + $0xe4] ss:$8 sps:$4 sm:$0xff]  }
  0x47   :  { %700 = vmatpush1.bf16.msra.mxu1 %v1110_v50  ;;  %v1134_v2 = vld [vmem:[#allocation7 + $0xe0] ss:$8 sps:$4 sm:$0xff]   ;;  %v1139_v3 = vld [vmem:[#allocation7 + $0xd4] ss:$8 sps:$4 sm:$0xff]   ;;  %v1137_v4 = vld [vmem:[#allocation7 + $0xd0] ss:$8 sps:$4 sm:$0xff]  }
  0x48   :  { %457 = vmatpush1.bf16.msra.mxu0 %v1073_v24  ;;  %701 = vmatprep.subr.bf16.mxu1 %v1115_v51  ;;  %v1142_v5 = vld [vmem:[#allocation7 + $0xc4] ss:$8 sps:$4 sm:$0xff]   ;;  %v1140_v6 = vld [vmem:[#allocation7 + $0xc0] ss:$8 sps:$4 sm:$0xff]   ;;  %v1145_v7 = vld [vmem:[#allocation7 + $0xb4] ss:$8 sps:$4 sm:$0xff]  }
  0x49   :  { %458 = vmatprep.subr.bf16.mxu0 %v1074_v25  ;;  %v1143_v8 = vld [vmem:[#allocation7 + $0xb0] ss:$8 sps:$4 sm:$0xff]   ;;  %v1148_v9 = vld [vmem:[#allocation7 + $0xa4] ss:$8 sps:$4 sm:$0xff]   ;;  %v1146_v10 = vld [vmem:[#allocation7 + $0xa0] ss:$8 sps:$4 sm:$0xff]  }
  0x4a   :  { %v229_v12 = vshrl.u32 %v228_v11, 7  ;;  %v226_v17 = vld [vmem:[%s1400_s4] sm:$0x3]  ;;  %v1164_v47 = vld [vmem:[#allocation8 + $0x18] sm:$0xff]  }
  0x4b   :  { %702 = vmatpush1.bf16.msra.mxu1 %v1113_v52  ;;  %v1165_v48 = vld [vmem:[#allocation8 + $0x50] sm:$0xff]  }
  0x4c   :  { %459 = vmatpush1.bf16.msra.mxu0 %v1076_v26  ;;  %703 = vmatprep.subr.bf16.mxu1 %v1118_v53  ;;  %v1371_v15 = vsub.s32 0, %v229_v12  ;;  %v1376_v18 = vsub.s32 1, %v229_v12  ;;  %v1166_v49 = vld [vmem:[#allocation8 + $0x10] sm:$0xff]  }
  0x4d   :  { %460 = vmatprep.subr.bf16.mxu0 %v1077_v27  ;;  %v276_v50 = vld [vmem:[%s1402_s6] sm:$0x3] }
  0x4e   :  { %v231_v20 = vrot.slane %v226_v17, %v1371_v15  ;;  %v235_v23 = vrot.slane %v226_v17, %v1376_v18  ;;  %v281_v51 = vrot.slane %v276_v50, %v1371_v15  ;;  %v285_v52 = vrot.slane %v276_v50, %v1376_v18 }
  0x4f   :  { %704 = vmatpush1.bf16.msra.mxu1 %v1116_v54 }
  0x50   :  { %461 = vmatpush1.bf16.msra.mxu0 %v1079_v28  ;;  %705 = vmatprep.subr.bf16.mxu1 %v1121_v55 }
  0x51   :  { %462 = vmatprep.subr.bf16.mxu0 %v1080_v29 }
  0x53   :  { %706 = vmatpush1.bf16.msra.mxu1 %v1119_v56 }
  0x54   :  { %463 = vmatpush1.bf16.msra.mxu0 %v1082_v30  ;;  %707 = vmatprep.subr.bf16.mxu1 %v1124_v57 }
  0x55   :  { %464 = vmatprep.subr.bf16.mxu0 %v1083_v31 }
  0x57   :  { %708 = vmatpush1.bf16.msra.mxu1 %v1122_v58 }
  0x58   :  { %465 = vmatpush2.bf16.msra.mxu0 %v1085_v32  ;;  %709 = vmatprep.subr.bf16.mxu1 %v1127_v59 }
  0x59   :  { %466 = vmatprep.subr.bf16.mxu0 %v1086_v33 }
  0x5b   :  { %710 = vmatpush1.bf16.msra.mxu1 %v1125_v60 }
  0x5c   :  { %467 = vmatpush2.bf16.msra.mxu0 %v1088_v34  ;;  %711 = vmatprep.subr.bf16.mxu1 %v1130_v61  ;;  %v1151_v34 = vld [vmem:[#allocation7 + $0x94] ss:$8 sps:$4 sm:$0xff]  }
  0x5d   :  { %468 = vmatprep.subr.bf16.mxu0 %v1089_v35  ;;  %v1149_v35 = vld [vmem:[#allocation7 + $0x90] ss:$8 sps:$4 sm:$0xff]  }
  0x5f   :  { %712 = vmatpush1.bf16.msra.mxu1 %v1128_v62 }
  0x60   :  { %469 = vmatpush2.bf16.msra.mxu0 %v1091_v36  ;;  %713 = vmatprep.subr.bf16.mxu1 %v1133_v63  ;;  %v1154_v36 = vld [vmem:[#allocation7 + $0x84] ss:$8 sps:$4 sm:$0xff]  }
  0x61   :  { %470 = vmatprep.subr.bf16.mxu0 %v1092_v37  ;;  %v1152_v37 = vld [vmem:[#allocation7 + $0x80] ss:$8 sps:$4 sm:$0xff]  }
  0x62   :  { %v1167_v63 = vld [vmem:[#allocation8 + $0x48] sm:$0xff]  }
  0x63   :  { %714 = vmatpush2.bf16.msra.mxu1 %v1131_v0  ;;  %v1168_v0 = vld [vmem:[#allocation8 + $0x8] sm:$0xff]  }
  0x64   :  { %471 = vmatpush2.bf16.msra.mxu0 %v1094_v38  ;;  %715 = vmatprep.subr.bf16.mxu1 %v1136_v1  ;;  %v1155_v38 = vld [vmem:[#allocation8 + $0x78] sm:$0xff]   ;;  %v1169_v1 = vld [vmem:[#allocation8 + $0x40] sm:$0xff]  }
  0x65   :  { %472 = vmatprep.subr.bf16.mxu0 %v1095_v39  ;;  %v1156_v39 = vld [vmem:[#allocation8 + $0x38] sm:$0xff]  }
  0x67   :  { %716 = vmatpush2.bf16.msra.mxu1 %v1134_v2  ;;  %v1170_v2 = vld [vmem:[#allocation8] sm:$0xff]  }
  0x68   :  { %473 = vmatpush2.bf16.msra.mxu0 %v1097_v40  ;;  %717 = vmatprep.subr.bf16.mxu1 %v1139_v3  ;;  %v1157_v40 = vld [vmem:[#allocation8 + $0x70] sm:$0xff]  }
  0x69   :  { %474 = vmatprep.subr.bf16.mxu0 %v1098_v41  ;;  %v1158_v41 = vld [vmem:[#allocation8 + $0x30] sm:$0xff]  }
  0x6a   :  { %v525_v3 = vld [vmem:[%s1404_s8] sm:$0x3]  ;;  %s1289_s8 = smov [#allocation10]  }
  0x6b   :  { %718 = vmatpush2.bf16.msra.mxu1 %v1137_v4  ;;  %v530_v4 = vrot.slane %v525_v3, %v1371_v15  ;;  %s925_s27 = sshll.u32 %s1289_s8, 4  ;;  %s926_s27 = int_to_ptr.vmem [resolvable:$true] %s925_s27 }
  0x6c   :  { %475 = vmatpush2.bf16.msra.mxu0 %v1100_v42  ;;  %719 = vmatprep.subr.bf16.mxu1 %v1142_v5  ;;  %v1159_v42 = vld [vmem:[#allocation8 + $0x68] sm:$0xff]   ;;  %v534_v5 = vrot.slane %v525_v3, %v1376_v18  ;;  %s1251_s28 = scalar_lea.vmem %s926_s27, 128  ;;  %p1256_p7 = scmp.lt.s32.totalorder %s926_s27, %s926_s27 }
  0x6d   :  { %476 = vmatprep.subr.bf16.mxu0 %v1101_v43  ;;  %v1160_v43 = vld [vmem:[#allocation8 + $0x28] sm:$0xff]   ;;  %p1252_p6 = scmp.ne.s32.totalorder %s926_s27, %s1251_s28  ;;  %p1257_p8 = scmp.lt.s32.totalorder %s1251_s28, %s1251_s28 }
  0x6f   :  { %720 = vmatpush2.bf16.msra.mxu1 %v1140_v6  ;;  %p1258_p9 = por %p1257_p8, %p1256_p7 }
  0x70   :  { %477 = vmatpush2.bf16.msra.mxu0 %v1103_v44  ;;  %721 = vmatprep.subr.bf16.mxu1 %v1145_v7  ;;  %v1161_v44 = vld [vmem:[#allocation8 + $0x60] sm:$0xff]  }
  0x71   :  { %478 = vmatprep.subr.bf16.mxu0 %v1104_v45  ;;  %v1162_v45 = vld [vmem:[#allocation8 + $0x20] sm:$0xff]   ;;  %p1259_p10 = pnand %p1258_p9, %p1252_p6 }
  0x73   :  { %722 = vmatpush2.bf16.msra.mxu1 %v1143_v8 }
  0x74   :  { %479 = vmatpush2.bf16.msra.mxu0 %v1106_v46  ;;  %723 = vmatprep.subr.bf16.mxu1 %v1148_v9  ;;  %v1163_v46 = vld [vmem:[#allocation8 + $0x58] sm:$0xff]  }
  0x75   :  { %1023 = vmatprep.subr.bf16.mxu0 %v1155_v38 }
  0x77   :  { %724 = vmatpush2.bf16.msra.mxu1 %v1146_v10 }
  0x78   :  { %725 = vmatprep.subr.bf16.mxu1 %v1151_v34 }
  0x7b   :  { %726 = vmatpush2.bf16.msra.mxu1 %v1149_v35 }
  0x7c   :  { %727 = vmatprep.subr.bf16.mxu1 %v1154_v36 }
  0x7f   :  { %728 = vmatpush2.bf16.msra.mxu1 %v1152_v37 }
  0xfa   :  { %v156_v13 = vpop.f32.mrf.mxu1 }
  0xfc   :  { %v158_v14 = vpop.f32.mrf.mxu1 }
  0xfe   :  { %v160_v16 = vpop.f32.mrf.mxu1 }
 0x100   :  { %v161_v19 = vpop.f32.mrf.mxu1 }
 0x101   :  { %v1006_v19 = vld [vmem:[%s1406_s10] ss:$0 sm:$0xff] }
 0x102   :  { %v219_v21 = vpop.f32.mrf.mxu1 }
 0x103   :  { %v220_v22 = vadd.f32 %v219_v21, %v156_v13 }
 0x104   :  { %v221_v24 = vpop.f32.mrf.mxu1 }
 0x105   :  { %v238_v25 = vadd.f32 %v231_v20, %v220_v22  ;;  %v222_v26 = vadd.f32 %v221_v24, %v158_v14 }
 0x106   :  { %v223_v27 = vpop.f32.mrf.mxu1 }
 0x107   :  { %v239_v28 = vadd.f32 %v235_v23, %v222_v26  ;;  %v240_v29 = vmax.f32 %v238_v25, 0.0 }
 0x108   :  { %v224_v30 = vpop.f32.mrf.mxu1 }
 0x109   :  { %v241_v31 = vmax.f32 %v239_v28, 0.0  ;;  %v242_v33 = vpack.c.bf16 %v240_v29, %v240_v29 }
 0x10b   :  { %v243_v32 = vpack.c.bf16 %v241_v31, %v241_v31 }
 0x10d   :  { %480 = vmatprep.mubr.bf16.mxu0 %v243_v32 }
 0x10e   :  { %481 = vmatmul.mubr.bf16.vlgmr.msra.gmra.mxu0 %v242_v33 }
 0x10f   :  { %1024 = vmatpush3.bf16.msra.mxu0 %v1156_v39 }
 0x110   :  { %1025 = vmatprep.subr.bf16.mxu0 %v1157_v40 }
 0x113   :  { %1026 = vmatpush3.bf16.msra.mxu0 %v1158_v41 }
 0x114   :  { %1027 = vmatprep.subr.bf16.mxu0 %v1159_v42 }
 0x117   :  { %1028 = vmatpush3.bf16.msra.mxu0 %v1160_v43 }
 0x118   :  { %1029 = vmatprep.subr.bf16.mxu0 %v1161_v44 }
 0x11b   :  { %1030 = vmatpush3.bf16.msra.mxu0 %v1162_v45 }
 0x11c   :  { %1031 = vmatprep.subr.bf16.mxu0 %v1163_v46 }
 0x11f   :  { %1032 = vmatpush3.bf16.msra.mxu0 %v1164_v47 }
 0x120   :  { %1033 = vmatprep.subr.bf16.mxu0 %v1165_v48 }
 0x123   :  { %1034 = vmatpush3.bf16.msra.mxu0 %v1166_v49 }
 0x124   :  { %1035 = vmatprep.subr.bf16.mxu0 %v1167_v63 }
 0x127   :  { %1036 = vmatpush3.bf16.msra.mxu0 %v1168_v0 }
 0x128   :  { %1037 = vmatprep.subr.bf16.mxu0 %v1169_v1 }
 0x12b   :  { %1038 = vmatpush3.bf16.msra.mxu0 %v1170_v2 }
 0x1ce   :  { %v482_v53 = vpop.f32.mrf.mxu0 }
 0x1cf   :  { %v483_v54 = vadd.f32 %v482_v53, %v281_v51 }
 0x1d0   :  { %v484_v55 = vpop.f32.mrf.mxu0 }
 0x1d1   :  { %v485_v56 = vadd.f32 %v484_v55, %v285_v52  ;;  %v489_v57 = vmax.f32 %v483_v54, 0.0 }
 0x1d2   :  { %v486_v58 = vpop.f32.mrf.mxu0 }
 0x1d3   :  { %v490_v59 = vmax.f32 %v485_v56, 0.0  ;;  %v491_v62 = vpack.c.bf16 %v489_v57, %v489_v57 }
 0x1d4   :  { %v487_v60 = vpop.f32.mrf.mxu0 }
 0x1d5   :  { %v492_v61 = vpack.c.bf16 %v490_v59, %v490_v59 }
 0x1d7   :  { %729 = vmatprep.mubr.bf16.mxu1 %v492_v61 }
 0x1d8   :  { %730 = vmatmul.mubr.bf16.vlgmr.msra.gmra.mxu1 %v491_v62 }
 0x298   :  { %v731_v6 = vpop.f32.mrf.mxu1 }
 0x299   :  { %v732_v7 = vadd.f32 %v731_v6, %v530_v4 }
 0x29a   :  { %v733_v8 = vpop.f32.mrf.mxu1 }
 0x29b   :  { %v734_v9 = vadd.f32 %v733_v8, %v534_v5  ;;  %v738_v10 = vmax.f32 %v732_v7, 0.0 }
 0x29c   :  { %v735_v11 = vpop.f32.mrf.mxu1 }
 0x29d   :  { %v739_v12 = vmax.f32 %v734_v9, 0.0  ;;  %v740_v16 = vpack.c.bf16 %v738_v10, %v738_v10 }
 0x29e   :  { %v736_v13 = vpop.f32.mrf.mxu1 }
 0x29f   :  { %v741_v14 = vpack.c.bf16 %v739_v12, %v739_v12 }
 0x2a1   :  { %909 = vmatprep.mubr.bf16.mxu0 %v741_v14 }
 0x2a2   :  { %910 = vmatmul.mubr.bf16.vlgmr.msra.gmra.mxu0 %v740_v16 }
 0x362   :  { %v1039_v17 = vpop.f32.mrf.mxu0 }
 0x364   :  { %v1040_v15 = vpop.f32.mrf.mxu0 }
 0x365   :  { %v1041_v20 = vadd.f32 %v1040_v15, %v1039_v17 }
 0x366   :  { %v1042_v18 = vpop.f32.mrf.mxu0 }
 0x367   :  { %v912_v21 = vadd.f32 %v1041_v20, %v1006_v19 }
 0x368   :  { %v1043_v22 = vpop.f32.mrf.mxu0 }
 0x369   :  { %v917_v23 = vmax.f32 %v912_v21, 0.0 }
 0x36b   :  { %918 = vst [vmem:[#allocation10] sm:$0xff] %v917_v23 }
 0x36c   :  { %1262 = shalt.err (!%p1259_p10)
}
 0x36d   :  { %928 = dma.vmem_to_hbm [thread:$0]  %s926_s27, 128, %s1407_s11, [#allocation4]  }
 0x36e   :  { %1277 = dma.done.wait [#allocation4], 128  }
 0x36f   :  { %1278 = vsyncadd [#allocation4], 4294967168 }
 0x370   :  { %932 = vsyncpa [#allocation3], 1 }
 0x371   :  { %933 = vsyncpa [#allocation6], 1 }
 0x372   :  { %934 = vsyncpa [#allocation9], 1 }
 0x373   :  { %935 = vsyncpa [#allocation4], 1 }

</bundles_post_ra>
